<compile_context>
chip_gen: v6e
topology: v6e:2x2x1
jax: 0.10.0
libtpu: 0.0.40
codegen_flags: <defaults>
</compile_context>

<pallas_src>
import functools

import jax
import jax.numpy as jnp
from jax import lax
from jax.experimental import pallas as pl
from jax.experimental.pallas import tpu as pltpu


def _round_up(x: int, m: int) -> int:
    return ((x + m - 1) // m) * m


_VMEM_LIMIT = 40 * 1024 * 1024  # safe on v5e/v6e (128 MiB phys) and v7x (64 MiB)


# ---------------------------------------------------------------------------
# Kernels
# ---------------------------------------------------------------------------

def _matvec_kernel(s_ref, a_ref, b_ref, o_ref):
    # s_ref: (TN, Dk)  batch tile of states (full contraction dim), f32
    # a_ref: (TD, Dk)  row tile of A (output lanes x contraction), f32 or bf16
    # b_ref: (1,  TD)  bias tile, f32
    # o_ref: (TN, TD)  lane-dense output tile, f32
    s = s_ref[...]
    a = a_ref[...]
    if a.dtype != s.dtype:
        s = s.astype(a.dtype)  # bf16 x bf16 MXU path (f32 accumulation below)
    # Contract the last dims of both operands: out = s @ a.T. The MXU handles
    # the transposed RHS natively -> no host-side transpose / extra HBM copy.
    o_ref[...] = (
        lax.dot_general(
            s, a,
            dimension_numbers=(((1,), (1,)), ((), ())),
            preferred_element_type=jnp.float32,
        )
        + b_ref[...]
    )


def _euler_kernel(s0_ref, a_ref, b_ref, o_ref, *, dt):
    # Fused explicit Euler:  state <- state + dt * (state @ A.T + b)
    # The grid's single "arbitrary" axis runs over time steps; every BlockSpec
    # returns block (0, 0), so A, b and the state (carried in the resident
    # output block) live in VMEM for the whole integration.
    step = pl.program_id(0)

    @pl.when(step == 0)
    def _():
        o_ref[...] = s0_ref[...]

    s = o_ref[...]
    a = a_ref[...]
    s_mm = s.astype(a.dtype) if a.dtype != s.dtype else s
    dydt = (
        lax.dot_general(
            s_mm, a,
            dimension_numbers=(((1,), (1,)), ((), ())),
            preferred_element_type=jnp.float32,
        )
        + b_ref[...]
    )
    o_ref[...] = s + dt * dydt


# ---------------------------------------------------------------------------
# Jitted pallas_call wrappers
# ---------------------------------------------------------------------------

@functools.partial(jax.jit, static_argnames=("np_", "tn", "td", "dk", "dout"))
def _forward_call(a_pad, b_pad, states, *, np_, tn, td, dk, dout):
    n, d = states.shape
    s_pad = jnp.zeros((np_, dk), jnp.float32).at[:n, :d].set(states)
    return pl.pallas_call(
        _matvec_kernel,
        out_shape=jax.ShapeDtypeStruct((np_, dout), jnp.float32),
        grid=(np_ // tn, dout // td),
        in_specs=[
            pl.BlockSpec((tn, dk), lambda i, j: (i, 0)),   # state batch tile
            pl.BlockSpec((td, dk), lambda i, j: (j, 0)),   # A row tile
            pl.BlockSpec((1, td), lambda i, j: (0, j)),    # bias tile
        ],
        out_specs=pl.BlockSpec((tn, td), lambda i, j: (i, j)),
        compiler_params=pltpu.CompilerParams(
            dimension_semantics=("parallel", "parallel"),
            vmem_limit_bytes=_VMEM_LIMIT,
        ),
    )(s_pad, a_pad, b_pad)


@functools.partial(jax.jit, static_argnames=("dt", "num_steps", "np_", "dk"))
def _euler_call(a_sq, b_sq, states, *, dt, num_steps, np_, dk):
    n, d = states.shape
    s_pad = jnp.zeros((np_, dk), jnp.float32).at[:n, :d].set(states)
    return pl.pallas_call(
        functools.partial(_euler_kernel, dt=dt),
        out_shape=jax.ShapeDtypeStruct((np_, dk), jnp.float32),
        grid=(num_steps,),
        in_specs=[
            pl.BlockSpec((np_, dk), lambda s: (0, 0)),   # initial state
            pl.BlockSpec((dk, dk), lambda s: (0, 0)),    # A (resident all steps)
            pl.BlockSpec((1, dk), lambda s: (0, 0)),     # b (resident all steps)
        ],
        out_specs=pl.BlockSpec((np_, dk), lambda s: (0, 0)),  # carried state
        compiler_params=pltpu.CompilerParams(
            dimension_semantics=("arbitrary",),
            vmem_limit_bytes=_VMEM_LIMIT,
        ),
    )(s_pad, a_sq, b_sq)


# ---------------------------------------------------------------------------
# Module-equivalent wrapper
# ---------------------------------------------------------------------------

class LinearODE:
    """Pallas-TPU equivalent of the PyTorch LinearODE module."""

    def __init__(self, A, b, *, weight_dtype=jnp.float32, batch_tile=256,
                 lane_tile=512, vmem_budget_bytes=24 * 1024 * 1024,
                 prefer_xla_when_tiny=False):
        A = jnp.asarray(A, jnp.float32)
        b = jnp.asarray(b, jnp.float32)
        D = A.shape[0]
        assert A.shape == (D, D) and b.shape == (D,)
        self.D = D
        self.A = A          # unpadded parameters (reference / XLA fast path)
        self.b = b
        self.prefer_xla_when_tiny = prefer_xla_when_tiny

        # --- tile selection (VMEM-budget aware; done once) ------------------
        dk = _round_up(D, 128)                     # contraction lanes
        tn_max = _round_up(batch_tile, 8)          # max batch tile (sublanes)
        esize = jnp.dtype(weight_dtype).itemsize
        td = min(max(128, (lane_tile // 128) * 128), dk)

        def _footprint(td_):
            # double-buffered VMEM bytes for one grid step (worst-case tn)
            return 2 * (td_ * dk * esize       # A row tile
                        + tn_max * td_ * 4     # output tile
                        + td_ * 4              # bias tile
                        + tn_max * dk * 4)     # state tile

        while td > 128 and _footprint(td) > vmem_budget_bytes:
            td -= 128
        # TODO(synk): for very large D (where even TD=128 blows the budget) add
        # a K (contraction) grid axis with an f32 accumulator + pl.when finalize.
        dout = _round_up(D, td)  # pad output lanes UP so TD stays wide
        self.dk, self.td, self.dout, self.tn_max = dk, td, dout, tn_max

        # --- parameters padded ONCE (hoisted out of the per-step path) ------
        a_pad = jnp.zeros((dout, dk), jnp.float32).at[:D, :D].set(A)
        self.A_pad = a_pad.astype(weight_dtype)          # streamed from HBM
        self.A_sq = a_pad[:dk, :].astype(weight_dtype)   # square pad (Euler)
        self.b_pad = jnp.zeros((1, dout), jnp.float32).at[0, :D].set(b)
        self.b_sq = self.b_pad[:, :dk]

    def forward(self, time, state):
        """dydt = A @ state + b   (matches the PyTorch module's forward)."""
        del time  # unused by the reference forward
        squeeze = state.ndim == 1
        s2 = (state.reshape(1, -1) if squeeze else state).astype(jnp.float32)
        N, D = s2.shape
        assert D == self.D

        if self.prefer_xla_when_tiny and N * self.dk <= 8 * 128:
            # Tiny single-shot problems: pallas_call fixed cost dominates.
            out = s2 @ self.A.T + self.b
            return out[0] if squeeze else out

        tn = min(_round_up(N, 8), self.tn_max)
        np_ = _round_up(N, tn)
        out = _forward_call(self.A_pad, self.b_pad, s2,
                            np_=np_, tn=tn, td=self.td,
                            dk=self.dk, dout=self.dout)
        out = out[:N, :D]
        return out[0] if squeeze else out

    __call__ = forward

    def integrate_euler(self, state0, dt, num_steps):
        """All Euler steps fused into ONE pallas_call; A resident in VMEM."""
        assert num_steps >= 1
        squeeze = state0.ndim == 1
        s2 = (state0.reshape(1, -1) if squeeze else state0).astype(jnp.float32)
        N, D = s2.shape
        assert D == self.D
        # TODO(synk): if (dk x dk) A does not fit VMEM for huge D, tile D inside
        # the step loop with a dydt scratch instead of a fully resident A.
        out = _euler_call(self.A_sq, self.b_sq, s2,
                          dt=float(dt), num_steps=int(num_steps),
                          np_=_round_up(N, 8), dk=self.dk)
        out = out[:N, :D]
        return out[0] if squeeze else out


if __name__ == "__main__":
    D = 32  # hidden/state dimension (number of genes in the linear ODE)

    key = jax.random.PRNGKey(0)
    kA, kb, ks, kS = jax.random.split(key, 4)

    A = jax.random.normal(kA, (D, D), dtype=jnp.float32) * 0.1
    b = jax.random.normal(kb, (D,), dtype=jnp.float32) * 0.1

    time = jnp.float32(0.0)
    state = jax.random.normal(ks, (D,), dtype=jnp.float32)

    # --- single-state forward(time, state): matches the PyTorch module -----
    ode = LinearODE(A, b)  # f32 weights -> exact path
    dydt = ode.forward(time, state)
    jax.block_until_ready(dydt)
    ref = A @ state + b
    assert dydt.shape == state.shape, "shape mismatch vs reference"
    assert jnp.allclose(dydt, ref, atol=1e-5, rtol=1e-5), "mismatch vs reference"

    # --- batched evaluation in one pallas_call ------------------------------
    N = 16
    states = jax.random.normal(kS, (N, D), dtype=jnp.float32)
    dydt_b = ode.forward(time, states)
    jax.block_until_ready(dydt_b)
    ref_b = states @ A.T + b
    assert dydt_b.shape == (N, D), "batched shape mismatch"
    assert jnp.allclose(dydt_b, ref_b, atol=1e-5, rtol=1e-5), "batched mismatch"

    # --- bf16-streamed A (halved HBM traffic), looser tolerance -------------
    ode_bf16 = LinearODE(A, b, weight_dtype=jnp.bfloat16)
    dydt_bf16 = ode_bf16.forward(time, states)
    jax.block_until_ready(dydt_bf16)
    assert jnp.allclose(dydt_bf16, ref_b, atol=5e-2, rtol=5e-2), "bf16 mismatch"

    # --- fused Euler integration: all steps in ONE pallas_call ---------------
    dt_, n_steps = 0.05, 20
    y = ode.integrate_euler(state, dt_, n_steps)
    jax.block_until_ready(y)
    y_ref = state
    for _ in range(n_steps):
        y_ref = y_ref + dt_ * (A @ y_ref + b)
    assert y.shape == state.shape, "euler shape mismatch"
    assert jnp.allclose(y, y_ref, atol=1e-4, rtol=1e-4), "euler mismatch"

    print("KERNEL_OK")
</pallas_src>

<mosaic_0001>
module attributes {stable_mosaic.version = 11 : i64} {
  func.func @_matvec_kernel(%arg0: i32, %arg1: i32, %arg2: memref<8x128xf32, #tpu.memory_space<vmem>>, %arg3: memref<128x128xf32, #tpu.memory_space<vmem>>, %arg4: memref<1x128xf32, #tpu.memory_space<vmem>>, %arg5: memref<8x128xf32, #tpu.memory_space<vmem>>) attributes {dimension_semantics = [#tpu.dimension_semantics<parallel>, #tpu.dimension_semantics<parallel>], iteration_bounds = array<i64: 1, 1>, scalar_prefetch = 0 : i64, scratch_operands = 0 : i64, tpu.core_type = #tpu.core_type<tc>, window_params = [{transform_indices = @transform_0, window_bounds = array<i64: 8, 128>}, {transform_indices = @transform_1, window_bounds = array<i64: 128, 128>}, {transform_indices = @transform_2, window_bounds = array<i64: 1, 128>}, {transform_indices = @transform_3, window_bounds = array<i64: 8, 128>}]} {
    %c0 = arith.constant 0 : index
    %c0_0 = arith.constant 0 : index
    %0 = vector.load %arg2[%c0, %c0_0] : memref<8x128xf32, #tpu.memory_space<vmem>>, vector<8x128xf32>
    %c0_1 = arith.constant 0 : index
    %c0_2 = arith.constant 0 : index
    %1 = vector.load %arg3[%c0_1, %c0_2] : memref<128x128xf32, #tpu.memory_space<vmem>>, vector<128x128xf32>
    %cst = arith.constant dense<0.000000e+00> : vector<8x128xf32>
    %2 = tpu.matmul %0, %1, %cst {dimension_numbers = #tpu.dot_dimension_numbers<[1], [1], [0], [0], [0, 0, 1, 0], [], []>} : vector<8x128xf32>, vector<128x128xf32>, vector<8x128xf32> -> vector<8x128xf32>
    %c0_3 = arith.constant 0 : index
    %c0_4 = arith.constant 0 : index
    %3 = vector.load %arg4[%c0_3, %c0_4] : memref<1x128xf32, #tpu.memory_space<vmem>>, vector<1x128xf32>
    %4 = vector.broadcast %3 : vector<1x128xf32> to vector<8x128xf32>
    %5 = arith.addf %2, %4 : vector<8x128xf32>
    %c0_5 = arith.constant 0 : index
    %c0_6 = arith.constant 0 : index
    %6 = vector.load %arg5[%c0_5, %c0_6] : memref<8x128xf32, #tpu.memory_space<vmem>>, vector<8x128xf32>
    tpu.vector_store %arg5[%c0_5, %c0_6], %5 {strides = array<i32>} : memref<8x128xf32, #tpu.memory_space<vmem>>, vector<8x128xf32>,
    return
  }
  func.func @transform_0(%arg0: i32, %arg1: i32) -> (i32, i32) {
    %c0_i32 = arith.constant 0 : i32
    %c0_i32_0 = arith.constant 0 : i32
    return %arg0, %c0_i32 : i32, i32
  }
  func.func @transform_1(%arg0: i32, %arg1: i32) -> (i32, i32) {
    %c0_i32 = arith.constant 0 : i32
    %c0_i32_0 = arith.constant 0 : i32
    return %arg1, %c0_i32 : i32, i32
  }
  func.func @transform_2(%arg0: i32, %arg1: i32) -> (i32, i32) {
    %c0_i32 = arith.constant 0 : i32
    %c0_i32_0 = arith.constant 0 : i32
    return %c0_i32, %arg1 : i32, i32
  }
  func.func @transform_3(%arg0: i32, %arg1: i32) -> (i32, i32) {
    %c0_i32 = arith.constant 0 : i32
    return %arg0, %arg1 : i32, i32
  }
}

</mosaic_0001>

<bundles_post_ra>
// kernel: _forward_call.1
= control target key start
LH: loop header
LB: loop body
LE: loop exit
PB: predicated region body
PF: predicated region fallthrough
CT: control target
= control target key end

     0   :  { %8 = vsyncpa [#allocation3], 0  ;;  %s280_s0 = inlined_call_operand.vmem [shape: f32[8,128], index: 0, kind: input, shape index: {}]   ;;  %s281_s1 = inlined_call_operand.hbm [shape: f32[128,128], index: 1, kind: input, shape index: {}]   ;;  %s282_s2 = inlined_call_operand.vmem [shape: f32[1,128], index: 2, kind: input, shape index: {}]   ;;  %s283_s3 = inlined_call_operand.hbm [shape: f32[8,128], index: 3, kind: output, shape index: {}]  }
   0x1   :  { %9 = vsyncpa [#allocation4], 0  ;;  %s242_s12 = smov [#allocation2]  }
   0x2   :  { %s17_s13 = sshll.u32 %s242_s12, 4  ;;  %s18_s13 = int_to_ptr.vmem [resolvable:$true] %s17_s13 }
   0x3   :  { %s206_s14 = scalar_lea.vmem %s18_s13, 2048  ;;  %p211_p1 = scmp.lt.s32.totalorder %s18_s13, %s18_s13 }
   0x4   :  { %p207_p0 = scmp.ne.s32.totalorder %s18_s13, %s206_s14  ;;  %p212_p2 = scmp.lt.s32.totalorder %s206_s14, %s206_s14 }
   0x6   :  { %p213_p3 = por %p212_p2, %p211_p1 }
   0x8   :  { %p214_p4 = pnand %p213_p3, %p207_p0 }
   0xa   :  { %217 = shalt.err (!%p214_p4)
}
   0xb   :  { %s243_s15 = smov 128   ;;  %s244_s16 = smov 8  }
   0xc   :  { %23 = dma.hbm_to_vmem [thread:$0]  %s281_s1, 2048, %s18_s13, [#allocation3], %s243_s15, %s243_s15, %s244_s16  }
   0xd   :  { %238 = dma.done.wait [#allocation3], 2048  }
   0xe   :  { %239 = vsyncadd [#allocation3], 4294965248  ;;  %v245_v0 = vmov 0.0   ;;  %vm246_vm0 = vmmov 0   ;;  %v45_v1 = vld [vmem:[#allocation2 + $0x78] sm:$0xff]  ;;  %v44_v2 = vld [vmem:[#allocation2 + $0x70] sm:$0xff] }
   0xf   :  { %157 = vmatprep.subr.mxu0 %v245_v0  ;;  %189 = vmatprep.mubr.msk.f32.mxu0 %vm246_vm0, %v245_v0  ;;  %v43_v3 = vld [vmem:[#allocation2 + $0x68] sm:$0xff]  ;;  %v42_v4 = vld [vmem:[#allocation2 + $0x60] sm:$0xff]  ;;  %v41_v5 = vld [vmem:[#allocation2 + $0x58] sm:$0xff]  ;;  %s247_s22 = smov [#allocation5]  }
  0x10   :  { %158 = vmatpush3.xpose.msra.mxu0 %v45_v1  ;;  %v40_v6 = vld [vmem:[#allocation2 + $0x50] sm:$0xff]  ;;  %v39_v7 = vld [vmem:[#allocation2 + $0x48] sm:$0xff]  ;;  %v38_v8 = vld [vmem:[#allocation2 + $0x40] sm:$0xff]  ;;  %s130_s23 = sshll.u32 %s247_s22, 4  ;;  %s131_s23 = int_to_ptr.vmem [resolvable:$true] %s130_s23 }
  0x11   :  { %159 = vmatprep.subr.mxu0 %v245_v0  ;;  %v37_v9 = vld [vmem:[#allocation2 + $0x38] sm:$0xff]  ;;  %v36_v10 = vld [vmem:[#allocation2 + $0x30] sm:$0xff]  ;;  %v35_v11 = vld [vmem:[#allocation2 + $0x28] sm:$0xff]  ;;  %s218_s24 = scalar_lea.vmem %s131_s23, 128  ;;  %p223_p6 = scmp.lt.s32.totalorder %s131_s23, %s131_s23 }
  0x12   :  { %v34_v12 = vld [vmem:[#allocation2 + $0x20] sm:$0xff]  ;;  %v33_v13 = vld [vmem:[#allocation2 + $0x18] sm:$0xff]  ;;  %v32_v14 = vld [vmem:[#allocation2 + $0x10] sm:$0xff]  ;;  %p219_p5 = scmp.ne.s32.totalorder %s131_s23, %s218_s24  ;;  %p224_p7 = scmp.lt.s32.totalorder %s218_s24, %s218_s24 }
  0x13   :  { %v31_v15 = vld [vmem:[#allocation2 + $0x8] sm:$0xff]  ;;  %v30_v16 = vld [vmem:[#allocation2] sm:$0xff] }
  0x14   :  { %160 = vmatpush3.xpose.msra.mxu0 %v44_v2  ;;  %v29_v17 = vld [vmem:[%s280_s0] sm:$0xff]  ;;  %p225_p8 = por %p224_p7, %p223_p6 }
  0x15   :  { %161 = vmatprep.subr.mxu0 %v245_v0  ;;  %v139_v18 = vld [vmem:[%s282_s2] ss:$0 sm:$0xff] }
  0x16   :  { %p226_p9 = pnand %p225_p8, %p219_p5 }
  0x18   :  { %162 = vmatpush3.xpose.msra.mxu0 %v43_v3 }
  0x19   :  { %163 = vmatprep.subr.mxu0 %v245_v0 }
  0x1c   :  { %164 = vmatpush3.xpose.msra.mxu0 %v42_v4 }
  0x1d   :  { %165 = vmatprep.subr.mxu0 %v245_v0 }
  0x20   :  { %166 = vmatpush3.xpose.msra.mxu0 %v41_v5 }
  0x21   :  { %167 = vmatprep.subr.mxu0 %v245_v0 }
  0x24   :  { %168 = vmatpush3.xpose.msra.mxu0 %v40_v6 }
  0x25   :  { %169 = vmatprep.subr.mxu0 %v245_v0 }
  0x28   :  { %170 = vmatpush3.xpose.msra.mxu0 %v39_v7 }
  0x29   :  { %171 = vmatprep.subr.mxu0 %v245_v0 }
  0x2c   :  { %172 = vmatpush3.xpose.msra.mxu0 %v38_v8 }
  0x2d   :  { %173 = vmatprep.subr.mxu0 %v245_v0 }
  0x30   :  { %174 = vmatpush3.xpose.msra.mxu0 %v37_v9 }
  0x31   :  { %175 = vmatprep.subr.mxu0 %v245_v0 }
  0x34   :  { %176 = vmatpush3.xpose.msra.mxu0 %v36_v10 }
  0x35   :  { %177 = vmatprep.subr.mxu0 %v245_v0 }
  0x38   :  { %178 = vmatpush3.xpose.msra.mxu0 %v35_v11 }
  0x39   :  { %179 = vmatprep.subr.mxu0 %v245_v0 }
  0x3c   :  { %180 = vmatpush3.xpose.msra.mxu0 %v34_v12 }
  0x3d   :  { %181 = vmatprep.subr.mxu0 %v245_v0 }
  0x40   :  { %182 = vmatpush3.xpose.msra.mxu0 %v33_v13 }
  0x41   :  { %183 = vmatprep.subr.mxu0 %v245_v0 }
  0x44   :  { %184 = vmatpush3.xpose.msra.mxu0 %v32_v14 }
  0x45   :  { %185 = vmatprep.subr.mxu0 %v245_v0 }
  0x48   :  { %186 = vmatpush3.xpose.msra.mxu0 %v31_v15 }
  0x49   :  { %187 = vmatprep.subr.mxu0 %v245_v0 }
  0x4c   :  { %188 = vmatpush3.xpose.msra.mxu0 %v30_v16 }
  0x4f   :  { %190 = vmatmul.mubr.f32.vlgmr.msra.gmra.mxu0 %v29_v17 }
 0x10f   :  { %v119_v19 = vpop.f32.mrf.mxu0 }
 0x110   :  { %v120_v20 = vadd.f32 %v139_v18, %v119_v19 }
 0x111   :  { %v191_v21 = vpop.f32.mrf.mxu0 }
 0x112   :  { %123 = vst [vmem:[#allocation5] sm:$0xff] %v120_v20 }
 0x113   :  { %229 = shalt.err (!%p226_p9)
}
 0x114   :  { %133 = dma.vmem_to_hbm [thread:$0]  %s131_s23, 128, %s283_s3, [#allocation4]  }
 0x115   :  { %240 = dma.done.wait [#allocation4], 128  }
 0x116   :  { %241 = vsyncadd [#allocation4], 4294967168 }
 0x117   :  { %137 = vsyncpa [#allocation3], 1 }
 0x118   :  { %138 = vsyncpa [#allocation4], 1 }

</bundles_post_ra>
